<compile_context>
chip_gen: v7x
topology: tpu7x:2x2x1
jax: 0.10.0
libtpu: 0.0.40
codegen_flags: <defaults>
</compile_context>

<pallas_src>
import functools

import jax
import jax.numpy as jnp
from jax.experimental import pallas as pl
from jax.experimental.pallas import tpu as pltpu


def _round_down(x, m):
    return (x // m) * m


def _ssl_tile_kernel(student_ref, teacher_ref, targets_ref, out_ref, *,
                     valid_rows, tile_rows, inv_d):
    """One batch tile -> partial sums packed into lanes 0..3 of an (8, 128) block.

    lanes: [0] sum of per-row MSE (unsupervised rows, unweighted)
           [1] sum of per-row BCE (supervised rows)
           [2] count of unsupervised rows
           [3] count of supervised rows
    """
    x1 = student_ref[...].astype(jnp.float32)        # (tb, D)
    x2 = teacher_ref[...].astype(jnp.float32)        # (tb, D)
    tar = targets_ref[...].astype(jnp.float32)       # (tb, 1)

    # Global row index -> mask out rows past the true batch (partial boundary block
    # and/or sublane padding).  Done with select so OOB garbage never propagates.
    row0 = pl.program_id(0) * tile_rows
    rows = row0 + jax.lax.broadcasted_iota(jnp.int32, (tile_rows, 1), 0)
    valid = rows < valid_rows

    # ---- per-row MSE (unsupervised branch) --------------------------------
    diff = x1 - x2
    mse_row = jnp.sum(diff * diff, axis=1, keepdims=True) * jnp.float32(inv_d)

    # ---- per-row BCE(sigmoid(x1), tar) (supervised branch), logits form ----
    #   -log(sigmoid(x))     = softplus(-x) = softplus(x) - x
    #   -log(1 - sigmoid(x)) = softplus(x)
    # One exp + one log per element; PyTorch clamps logs at -100 -> min(., 100).
    sp = jnp.maximum(x1, 0.0) + jnp.log(1.0 + jnp.exp(-jnp.abs(x1)))  # softplus(x1)
    s_logp = jnp.sum(jnp.minimum(sp - x1, 100.0), axis=1, keepdims=True)   # (tb, 1)
    s_log1mp = jnp.sum(jnp.minimum(sp, 100.0), axis=1, keepdims=True)      # (tb, 1)
    # tar is constant per row -> factored out of the feature-dim reduction.
    bce_row = (tar * s_logp + (1.0 - tar) * s_log1mp) * jnp.float32(inv_d)

    is_unsup = valid & (tar == -1.0)
    is_sup = valid & (tar != -1.0)

    unsup_sum = jnp.sum(jnp.where(is_unsup, mse_row, 0.0))   # weight applied in wrapper
    sup_sum = jnp.sum(jnp.where(is_sup, bce_row, 0.0))
    cu = jnp.sum(jnp.where(is_unsup, 1.0, 0.0))
    cs = jnp.sum(jnp.where(is_sup, 1.0, 0.0))

    lane = jax.lax.broadcasted_iota(jnp.int32, (8, 128), 1)
    out_ref[...] = (jnp.where(lane == 0, unsup_sum, 0.0)
                    + jnp.where(lane == 1, sup_sum, 0.0)
                    + jnp.where(lane == 2, cu, 0.0)
                    + jnp.where(lane == 3, cs, 0.0))


def semi_supervised_loss(student, teacher, targets, weight, *,
                         tile_b=1024, block_bytes_budget=8 * 1024 * 1024):
    """student, teacher: [B, D] (any float dtype, cast to f32 in-kernel);
    targets: [B] with -1 => unsupervised, otherwise a value in [0, 1];
    weight: scalar. Returns (total, unsup_mean, sup_mean)."""
    B, D = student.shape
    tgt = jnp.asarray(targets).astype(jnp.float32).reshape(B, 1)

    # Tiny batches: pad up to one sublane (cheap).  Larger batches: no pad copy;
    # the boundary tile is partial and rows >= B are masked in-kernel.
    if B < 8:
        pad = 8 - B
        student = jnp.pad(student, ((0, pad), (0, 0)))
        teacher = jnp.pad(teacher, ((0, pad), (0, 0)))
        tgt = jnp.pad(tgt, ((0, pad), (0, 0)))
        b_arr = 8
    else:
        b_arr = B

    # Adaptive batch tile: keep (student + teacher) blocks, double-buffered, well
    # inside the default scoped-VMEM limit regardless of D / dtype.
    bytes_per_row = D * (jnp.dtype(student.dtype).itemsize
                         + jnp.dtype(teacher.dtype).itemsize)
    tb = max(8, min(_round_down(int(tile_b), 8),
                    _round_down(b_arr, 8),
                    _round_down(block_bytes_budget // max(bytes_per_row, 1), 8)))
    num_tiles = pl.cdiv(b_arr, tb)

    kernel = functools.partial(_ssl_tile_kernel,
                               valid_rows=B, tile_rows=tb, inv_d=1.0 / D)

    partials = pl.pallas_call(
        kernel,
        out_shape=jax.ShapeDtypeStruct((num_tiles * 8, 128), jnp.float32),
        grid=(num_tiles,),
        in_specs=[
            pl.BlockSpec((tb, D), lambda i: (i, 0)),   # student  (native dtype)
            pl.BlockSpec((tb, D), lambda i: (i, 0)),   # teacher  (native dtype)
            pl.BlockSpec((tb, 1), lambda i: (i, 0)),   # targets  (f32, per-row)
        ],
        out_specs=pl.BlockSpec((8, 128), lambda i: (i, 0)),
        compiler_params=pltpu.CompilerParams(
            dimension_semantics=("parallel",)),
    )(student, teacher, tgt)

    # Reduce per-tile partials (lanes 0..3 of sublane 0 of each tile block).
    sums = jnp.sum(partials.reshape(num_tiles, 8, 128)[:, 0, :4], axis=0)    # (4,)
    unsup_sum = sums[0] * jnp.asarray(weight, jnp.float32)
    sup_sum = sums[1]
    cu, cs = sums[2], sums[3]

    # Branch structure of the PyTorch module, expressed with where().
    unsup_mean = jnp.where(cu > 0, unsup_sum / jnp.maximum(cu, 1.0), 0.0)
    sup_mean = jnp.where(cs > 0, sup_sum / jnp.maximum(cs, 1.0), 0.0)
    total = jnp.where(
        (cu > 0) & (cs > 0),
        0.5 * (unsup_mean + sup_mean),
        jnp.where(cu > 0, unsup_mean, jnp.where(cs > 0, sup_mean, 0.0)),
    )
    return total, unsup_mean, sup_mean


def _ref_loss(st, te, tg, w):
    """Pure-JAX reference matching the PyTorch module (sigmoid + clamped logs)."""
    st = st.astype(jnp.float32)
    te = te.astype(jnp.float32)
    mse = jnp.mean((st - te) ** 2, axis=1)
    p = jax.nn.sigmoid(st)
    t = tg[:, None]
    bce = jnp.mean(-(t * jnp.maximum(jnp.log(p), -100.0)
                     + (1.0 - t) * jnp.maximum(jnp.log(1.0 - p), -100.0)), axis=1)
    mu = tg == -1.0
    cu = jnp.sum(mu)
    cs = jnp.sum(~mu)
    u = jnp.sum(jnp.where(mu, w * mse, 0.0)) / jnp.maximum(cu, 1)
    s = jnp.sum(jnp.where(~mu, bce, 0.0)) / jnp.maximum(cs, 1)
    u = jnp.where(cu > 0, u, 0.0)
    s = jnp.where(cs > 0, s, 0.0)
    tot = jnp.where((cu > 0) & (cs > 0), 0.5 * (u + s),
                    jnp.where(cu > 0, u, jnp.where(cs > 0, s, 0.0)))
    return tot, u, s


if __name__ == "__main__":
    key = jax.random.PRNGKey(0)
    k1, k2 = jax.random.split(key)
    B, D = 12, 128
    student = jax.random.normal(k1, (B, D), dtype=jnp.float32)
    teacher = jax.random.normal(k2, (B, D), dtype=jnp.float32)
    # mix of unsupervised (-1) and supervised (0/1) samples
    targets = jnp.array([-1., 0., 1., -1., 1., -1., 0., 1., -1., 0., 1., -1.],
                        dtype=jnp.float32)
    weight = 0.5

    # 1) mixed batch; tile_b=8 -> 2 grid steps, B=12 not a multiple of the tile:
    #    exercises the partial boundary block + in-kernel row-masking path.
    out = semi_supervised_loss(student, teacher, targets, weight, tile_b=8)
    jax.block_until_ready(out)
    ref = _ref_loss(student, teacher, targets, weight)
    for a, b in zip(out, ref):
        assert jnp.allclose(a, b, rtol=1e-4, atol=1e-4), (a, b)

    # 2) all-unsupervised branch (default adaptive tile size).
    targets_u = jnp.full((B,), -1.0, dtype=jnp.float32)
    out_u = semi_supervised_loss(student, teacher, targets_u, weight)
    jax.block_until_ready(out_u)
    ref_u = _ref_loss(student, teacher, targets_u, weight)
    for a, b in zip(out_u, ref_u):
        assert jnp.allclose(a, b, rtol=1e-5, atol=1e-5), (a, b)

    # 3) tiny all-supervised batch (B < 8, bf16 inputs) -> sublane-pad path +
    #    native-dtype in-kernel cast.
    st_s = student[:4].astype(jnp.bfloat16)
    te_s = teacher[:4].astype(jnp.bfloat16)
    tg_s = jnp.array([0., 1., 1., 0.], dtype=jnp.float32)
    out_s = semi_supervised_loss(st_s, te_s, tg_s, weight)
    jax.block_until_ready(out_s)
    ref_s = _ref_loss(st_s, te_s, tg_s, weight)
    for a, b in zip(out_s, ref_s):
        assert jnp.allclose(a, b, rtol=1e-3, atol=1e-3), (a, b)

    print("KERNEL_OK")
</pallas_src>

<mosaic_0001>
module attributes {stable_mosaic.version = 11 : i64} {
  func.func @_ssl_tile_kernel(%arg0: i32, %arg1: memref<8x128xf32, #tpu.memory_space<vmem>>, %arg2: memref<8x128xf32, #tpu.memory_space<vmem>>, %arg3: memref<8x1xf32, #tpu.memory_space<vmem>>, %arg4: memref<8x128xf32, #tpu.memory_space<vmem>>) attributes {dimension_semantics = [#tpu.dimension_semantics<parallel>], iteration_bounds = array<i64: 2>, scalar_prefetch = 0 : i64, scratch_operands = 0 : i64, tpu.core_type = #tpu.core_type<tc>, window_params = [{transform_indices = @transform_0, window_bounds = array<i64: 8, 128>}, {transform_indices = @transform_1, window_bounds = array<i64: 8, 128>}, {transform_indices = @transform_2, window_bounds = array<i64: 8, 1>}, {transform_indices = @transform_3, window_bounds = array<i64: 8, 128>}]} {
    %c0 = arith.constant 0 : index
    %c0_0 = arith.constant 0 : index
    %0 = vector.load %arg1[%c0, %c0_0] : memref<8x128xf32, #tpu.memory_space<vmem>>, vector<8x128xf32>
    %c0_1 = arith.constant 0 : index
    %c0_2 = arith.constant 0 : index
    %1 = vector.load %arg2[%c0_1, %c0_2] : memref<8x128xf32, #tpu.memory_space<vmem>>, vector<8x128xf32>
    %c0_3 = arith.constant 0 : index
    %c0_4 = arith.constant 0 : index
    %2 = vector.load %arg3[%c0_3, %c0_4] : memref<8x1xf32, #tpu.memory_space<vmem>>, vector<8x1xf32>
    %c8_i32 = arith.constant 8 : i32
    %3 = arith.muli %arg0, %c8_i32 : i32
    %4 = tpu.iota {dimensions = array<i32: 0>} : vector<8x1xi32>
    %5 = vector.broadcast %3 : i32 to vector<8x1xi32>
    %6 = arith.addi %5, %4 : vector<8x1xi32>
    %c12_i32 = arith.constant 12 : i32
    %7 = vector.broadcast %c12_i32 : i32 to vector<8x1xi32>
    %8 = arith.cmpi slt, %6, %7 : vector<8x1xi32>
    %9 = arith.subf %0, %1 : vector<8x128xf32>
    %10 = arith.mulf %9, %9 : vector<8x128xf32>
    %cst = arith.constant dense<0.000000e+00> : vector<8xf32>
    %11 = vector.multi_reduction <add>, %10, %cst [1] : vector<8x128xf32> to vector<8xf32>
    %12 = vector.shape_cast %11 : vector<8xf32> to vector<8x1xf32>
    %cst_5 = arith.constant 7.812500e-03 : f32
    %13 = vector.broadcast %cst_5 : f32 to vector<8x1xf32>
    %14 = arith.mulf %12, %13 : vector<8x1xf32>
    %cst_6 = arith.constant 0.000000e+00 : f32
    %15 = vector.broadcast %cst_6 : f32 to vector<8x128xf32>
    %16 = arith.maximumf %0, %15 : vector<8x128xf32>
    %17 = math.absf %0 : vector<8x128xf32>
    %cst_7 = arith.constant 0.000000e+00 : f32
    %18 = vector.broadcast %cst_7 : f32 to vector<8x128xf32>
    %19 = arith.subf %18, %17 : vector<8x128xf32>
    %20 = math.exp %19 : vector<8x128xf32>
    %cst_8 = arith.constant 1.000000e+00 : f32
    %21 = vector.broadcast %cst_8 : f32 to vector<8x128xf32>
    %22 = arith.addf %21, %20 : vector<8x128xf32>
    %23 = math.log %22 : vector<8x128xf32>
    %24 = arith.addf %16, %23 : vector<8x128xf32>
    %25 = arith.subf %24, %0 : vector<8x128xf32>
    %cst_9 = arith.constant 1.000000e+02 : f32
    %26 = vector.broadcast %cst_9 : f32 to vector<8x128xf32>
    %27 = arith.minimumf %25, %26 : vector<8x128xf32>
    %cst_10 = arith.constant dense<0.000000e+00> : vector<8xf32>
    %28 = vector.multi_reduction <add>, %27, %cst_10 [1] : vector<8x128xf32> to vector<8xf32>
    %29 = vector.shape_cast %28 : vector<8xf32> to vector<8x1xf32>
    %cst_11 = arith.constant 1.000000e+02 : f32
    %30 = vector.broadcast %cst_11 : f32 to vector<8x128xf32>
    %31 = arith.minimumf %24, %30 : vector<8x128xf32>
    %cst_12 = arith.constant dense<0.000000e+00> : vector<8xf32>
    %32 = vector.multi_reduction <add>, %31, %cst_12 [1] : vector<8x128xf32> to vector<8xf32>
    %33 = vector.shape_cast %32 : vector<8xf32> to vector<8x1xf32>
    %34 = arith.mulf %2, %29 : vector<8x1xf32>
    %cst_13 = arith.constant 1.000000e+00 : f32
    %35 = vector.broadcast %cst_13 : f32 to vector<8x1xf32>
    %36 = arith.subf %35, %2 : vector<8x1xf32>
    %37 = arith.mulf %36, %33 : vector<8x1xf32>
    %38 = arith.addf %34, %37 : vector<8x1xf32>
    %cst_14 = arith.constant 7.812500e-03 : f32
    %39 = vector.broadcast %cst_14 : f32 to vector<8x1xf32>
    %40 = arith.mulf %38, %39 : vector<8x1xf32>
    %cst_15 = arith.constant -1.000000e+00 : f32
    %41 = vector.broadcast %cst_15 : f32 to vector<8x1xf32>
    %42 = arith.cmpf oeq, %2, %41 : vector<8x1xf32>
    %43 = arith.andi %8, %42 : vector<8x1xi1>
    %cst_16 = arith.constant -1.000000e+00 : f32
    %44 = vector.broadcast %cst_16 : f32 to vector<8x1xf32>
    %45 = arith.cmpf one, %2, %44 : vector<8x1xf32>
    %46 = arith.andi %8, %45 : vector<8x1xi1>
    %cst_17 = arith.constant 0.000000e+00 : f32
    %47 = vector.broadcast %cst_17 : f32 to vector<8x1xf32>
    %48 = arith.select %43, %14, %47 : vector<8x1xi1>, vector<8x1xf32>
    %49 = vector.shape_cast %48 : vector<8x1xf32> to vector<1x8x1xf32>
    %cst_18 = arith.constant dense<0.000000e+00> : vector<1xf32>
    %50 = vector.multi_reduction <add>, %49, %cst_18 [1, 2] : vector<1x8x1xf32> to vector<1xf32>
    %51 = vector.shape_cast %50 : vector<1xf32> to vector<1x1x1xf32>
    %52 = vector.extract %51[0, 0, 0] : f32 from vector<1x1x1xf32>
    %cst_19 = arith.constant 0.000000e+00 : f32
    %53 = vector.broadcast %cst_19 : f32 to vector<8x1xf32>
    %54 = arith.select %46, %40, %53 : vector<8x1xi1>, vector<8x1xf32>
    %55 = vector.shape_cast %54 : vector<8x1xf32> to vector<1x8x1xf32>
    %cst_20 = arith.constant dense<0.000000e+00> : vector<1xf32>
    %56 = vector.multi_reduction <add>, %55, %cst_20 [1, 2] : vector<1x8x1xf32> to vector<1xf32>
    %57 = vector.shape_cast %56 : vector<1xf32> to vector<1x1x1xf32>
    %58 = vector.extract %57[0, 0, 0] : f32 from vector<1x1x1xf32>
    %cst_21 = arith.constant 1.000000e+00 : f32
    %cst_22 = arith.constant 0.000000e+00 : f32
    %59 = vector.broadcast %cst_21 : f32 to vector<8x1xf32>
    %60 = vector.broadcast %cst_22 : f32 to vector<8x1xf32>
    %61 = arith.select %43, %59, %60 : vector<8x1xi1>, vector<8x1xf32>
    %62 = vector.shape_cast %61 : vector<8x1xf32> to vector<1x8x1xf32>
    %cst_23 = arith.constant dense<0.000000e+00> : vector<1xf32>
    %63 = vector.multi_reduction <add>, %62, %cst_23 [1, 2] : vector<1x8x1xf32> to vector<1xf32>
    %64 = vector.shape_cast %63 : vector<1xf32> to vector<1x1x1xf32>
    %65 = vector.extract %64[0, 0, 0] : f32 from vector<1x1x1xf32>
    %cst_24 = arith.constant 1.000000e+00 : f32
    %cst_25 = arith.constant 0.000000e+00 : f32
    %66 = vector.broadcast %cst_24 : f32 to vector<8x1xf32>
    %67 = vector.broadcast %cst_25 : f32 to vector<8x1xf32>
    %68 = arith.select %46, %66, %67 : vector<8x1xi1>, vector<8x1xf32>
    %69 = vector.shape_cast %68 : vector<8x1xf32> to vector<1x8x1xf32>
    %cst_26 = arith.constant dense<0.000000e+00> : vector<1xf32>
    %70 = vector.multi_reduction <add>, %69, %cst_26 [1, 2] : vector<1x8x1xf32> to vector<1xf32>
    %71 = vector.shape_cast %70 : vector<1xf32> to vector<1x1x1xf32>
    %72 = vector.extract %71[0, 0, 0] : f32 from vector<1x1x1xf32>
    %73 = tpu.iota {dimensions = array<i32: 1>} : vector<8x128xi32>
    %c0_i32 = arith.constant 0 : i32
    %74 = vector.broadcast %c0_i32 : i32 to vector<8x128xi32>
    %75 = arith.cmpi eq, %73, %74 : vector<8x128xi32>
    %cst_27 = arith.constant 0.000000e+00 : f32
    %76 = vector.broadcast %52 : f32 to vector<8x128xf32>
    %77 = vector.broadcast %cst_27 : f32 to vector<8x128xf32>
    %78 = arith.select %75, %76, %77 : vector<8x128xi1>, vector<8x128xf32>
    %c1_i32 = arith.constant 1 : i32
    %79 = vector.broadcast %c1_i32 : i32 to vector<8x128xi32>
    %80 = arith.cmpi eq, %73, %79 : vector<8x128xi32>
    %cst_28 = arith.constant 0.000000e+00 : f32
    %81 = vector.broadcast %58 : f32 to vector<8x128xf32>
    %82 = vector.broadcast %cst_28 : f32 to vector<8x128xf32>
    %83 = arith.select %80, %81, %82 : vector<8x128xi1>, vector<8x128xf32>
    %84 = arith.addf %78, %83 : vector<8x128xf32>
    %c2_i32 = arith.constant 2 : i32
    %85 = vector.broadcast %c2_i32 : i32 to vector<8x128xi32>
    %86 = arith.cmpi eq, %73, %85 : vector<8x128xi32>
    %cst_29 = arith.constant 0.000000e+00 : f32
    %87 = vector.broadcast %65 : f32 to vector<8x128xf32>
    %88 = vector.broadcast %cst_29 : f32 to vector<8x128xf32>
    %89 = arith.select %86, %87, %88 : vector<8x128xi1>, vector<8x128xf32>
    %90 = arith.addf %84, %89 : vector<8x128xf32>
    %c3_i32 = arith.constant 3 : i32
    %91 = vector.broadcast %c3_i32 : i32 to vector<8x128xi32>
    %92 = arith.cmpi eq, %73, %91 : vector<8x128xi32>
    %cst_30 = arith.constant 0.000000e+00 : f32
    %93 = vector.broadcast %72 : f32 to vector<8x128xf32>
    %94 = vector.broadcast %cst_30 : f32 to vector<8x128xf32>
    %95 = arith.select %92, %93, %94 : vector<8x128xi1>, vector<8x128xf32>
    %96 = arith.addf %90, %95 : vector<8x128xf32>
    %c0_31 = arith.constant 0 : index
    %c0_32 = arith.constant 0 : index
    %97 = vector.load %arg4[%c0_31, %c0_32] : memref<8x128xf32, #tpu.memory_space<vmem>>, vector<8x128xf32>
    tpu.vector_store %arg4[%c0_31, %c0_32], %96 {strides = array<i32>} : memref<8x128xf32, #tpu.memory_space<vmem>>, vector<8x128xf32>,
    return
  }
  func.func @transform_0(%arg0: i32) -> (i32, i32) {
    %c0_i32 = arith.constant 0 : i32
    %c0_i32_0 = arith.constant 0 : i32
    return %arg0, %c0_i32 : i32, i32
  }
  func.func @transform_1(%arg0: i32) -> (i32, i32) {
    %c0_i32 = arith.constant 0 : i32
    %c0_i32_0 = arith.constant 0 : i32
    return %arg0, %c0_i32 : i32, i32
  }
  func.func @transform_2(%arg0: i32) -> (i32, i32) {
    %c0_i32 = arith.constant 0 : i32
    %c0_i32_0 = arith.constant 0 : i32
    return %arg0, %c0_i32 : i32, i32
  }
  func.func @transform_3(%arg0: i32) -> (i32, i32) {
    %c0_i32 = arith.constant 0 : i32
    %c0_i32_0 = arith.constant 0 : i32
    return %arg0, %c0_i32 : i32, i32
  }
}

</mosaic_0001>

<bundles_post_ra>
// kernel: tpu_custom_call.1
= control target key start
LH: loop header
LB: loop body
LE: loop exit
PB: predicated region body
PF: predicated region fallthrough
CT: control target
= control target key end

     0   :  { %8 = vsyncpa [#allocation3], 0  ;;  %s810_s0 = inlined_call_operand.vmem [shape: f32[12,128], index: 0, kind: input, shape index: {}]   ;;  %s811_s1 = inlined_call_operand.hbm [shape: f32[12,128], index: 1, kind: input, shape index: {}]   ;;  %s812_s2 = inlined_call_operand.vmem [shape: f32[12,1], index: 2, kind: input, shape index: {}]   ;;  %s813_s3 = inlined_call_operand.hbm [shape: f32[16,128], index: 3, kind: output, shape index: {}]  }
   0x1   :  { %10 = vsyncpa [#allocation3 + $0x1], 0 }
   0x2   :  { %11 = vsyncpa [#allocation4], 0 }
   0x3   :  { %13 = vsyncpa [#allocation4 + $0x1], 0  ;;  %s625_s12 = smov 0   ;;  %s627_s13 = smov 0  }
   0x4   :  { %s629_s14 = smov 0   ;;  %s631_s15 = smov 0  }
   0x5 LB: > { %s646_s16 = sadd.s32 4294967295, %s600_s15   ;;  %s430_s17 = sadd.s32 4294967294, %s600_s15   ;;  %s600_s15 = sphi %s631_s15, %s828_s15   ;;  %s596_s14 = sphi %s629_s14, %s827_s14   ;;  %s592_s13 = sphi %s627_s13, %s826_s13   ;;  %s588_s12 = sphi %s625_s12, %s825_s12  }
   0x6   : > { %s650_s18 = sadd.s32 1, %s600_s15   ;;  %s52_s19 = sadd.s32 1, %s596_s14 }
   0x7   : > { %s49_s20 = ssub.s32 %s600_s15, %s650_s18  ;;  %p59_p0 = scmp.ne.s32.totalorder %s596_s14, %s592_s13 }
   0x8   : > { %p50_p1 = scmp.eq.s32.totalorder %s49_s20, 0  ;;  %p60_p2 = scmp.eq.s32.totalorder %s600_s15, 0 }
   0x9   : > { %p65_p3 = scmp.ne.s32.totalorder %s592_s13, %s588_s12  ;;  %p66_p4 = scmp.eq.s32.totalorder %s646_s16, 0 }
   0xa   : > { %s662_s21 = scalar_select %p50_p1, %s596_s14, %s52_s19  }
   0xb   : > { %p664_p5 = por %p60_p2, %p59_p0  ;;  %p668_p6 = por %p66_p4, %p65_p3 }
   0xc   : > { %p115_p7 = scmp.eq.s32.totalorder %s646_s16, 1  ;;  %p121_p8 = scmp.eq.s32.totalorder %s430_s17, 1 }
   0xd   : > { %p465_p10 = scmp.lt.s32.totalorder %s600_s15, 2  ;;  %s148_s26 = sand.u32 1, %s596_s14  }
   0xe   : > { %p675_p11 = por %p115_p7, %p59_p0  ;;  %p679_p12 = por %p121_p8, %p65_p3 }
   0xf   : > { %s434_s27 = sshll.u32 %s600_s15, 7  ;;  %s433_s28 = sshll.u32 %s148_s26, 3 }
  0x10   : > { %s817_s24 = scalar_select %p675_p11, 1, 0 }
  0x11   : > { %s818_s25 = scalar_select %p679_p12, 1, 0 }
  0x12   : > { %s688_s4 = scalar_lea.hbm %s811_s1, %s434_s27  ;;  %s152_s5 = scalar_lea.vmem [#allocation2], %s433_s28 }
  0x13   : > { %s159_s6 = sshll.u32 %s152_s5, 4  ;;  %p692_p13 = pnand %p465_p10, %p664_p5  ;;  %s696_s6 = int_to_ptr.vmem [resolvable:$true] %s159_s6 }
  0x14   : > { %s149_s8 = scalar_lea.sflag [#allocation3], %s148_s26  ;;  %s504_s9 = scalar_lea.hbm %s688_s4, 128 }
  0x15   : > { %p505_p2 = scmp.ne.s32.totalorder %s688_s4, %s504_s9  ;;  %p506_p3 = pneg %p692_p13 }
  0x16   : > { %s509_s17 = scalar_lea.hbm %s811_s1, 256  ;;  %p510_p5 = scmp.lt.u32.totalorder %s688_s4, %s811_s1 }
  0x17   : > { %p507_p4 = pnand %p506_p3, %p505_p2  ;;  %p511_p8 = scmp.lt.u32.totalorder %s509_s17, %s504_s9 }
  0x18   : > { %p513_p9 = scmp.lt.u32.totalorder %s504_s9, %s688_s4 }
  0x19   : > { %p508_p7 = pneg %p507_p4  ;;  %p512_p10 = por %p511_p8, %p510_p5 }
  0x1b   : > { %p514_p0 = por %p513_p9, %p512_p10 }
  0x1d   : > { %p515_p1 = pnand %p514_p0, %p508_p7 }
  0x1f   : > { %518 = shalt.err (!%p515_p1)
}
  0x20   : > { %s519_s22 = scalar_lea.vmem %s696_s6, 128  ;;  %s602_s26 = smov [#allocation2]  }
  0x21   : > { %p520_p2 = scmp.ne.s32.totalorder %s696_s6, %s519_s22  ;;  %s524_s27 = sshll.u32 %s602_s26, 4  ;;  %s525_s27 = int_to_ptr.vmem [resolvable:$false] %s524_s27 }
  0x22   : > { %s526_s28 = scalar_lea.vmem %s525_s27, 256  ;;  %p527_p11 = scmp.lt.s32.totalorder %s696_s6, %s525_s27 }
  0x23   : > { %p522_p4 = pnand %p520_p2, %p506_p3  ;;  %p528_p5 = scmp.lt.s32.totalorder %s526_s28, %s519_s22 }
  0x25   : > { %p523_p12 = pneg %p522_p4  ;;  %p529_p8 = por %p528_p5, %p527_p11 }
  0x27   : > { %p530_p9 = pnand %p529_p8, %p523_p12 }
  0x29   : > { %533 = shalt.err (!%p530_p9)
}
  0x2a   : > { %460 = dma.hbm_to_vmem [thread:$0]  (!%p692_p13), %s688_s4, 128, %s696_s6, %s149_s8  }
  0x2b   : > { %p820_p0 = scmp.lt.s32.totalorder %s600_s15, 3  ;;  %p821_p1 = scmp.ge.s32.totalorder %s600_s15, 1 }
  0x2d   : > { %p172_p3 = pnand %p821_p1, %p820_p0 }
  0x2e   : > { %s730_s29 = sand.u32 (!%p172_p3), 1, %s592_s13  }
  0x2f   : > { %175 = sbr.rel (%p172_p3) target bundleno = 480 (0x1e0), region = 32  ;;  %s436_s30 = sshll.u32 (!%p172_p3), %s730_s29, 3 }
  0x30   : > { %s178_s5 = scalar_lea.sflag (!%p172_p3), [#allocation3], %s730_s29  ;;  %s181_s7 = scalar_lea.vmem (!%p172_p3), [#allocation2], %s436_s30 }
  0x36   : > { %579 = dma.done.wait (%p668_p6), %s178_s5, 128  }
  0x37   : > { %581 = vsyncadd (%p668_p6), %s178_s5, 4294967168  ;;  %p212_p11 = scmp.lt.s32.totalorder %s646_s16, 1  ;;  %v221_v1 = vld [vmem:[%s181_s7] sm:$0xff]  ;;  %v224_v16 = vlaneseq  ;;  %s440_s23 = sshll.u32 %s646_s16, 3  ;;  %vm260_vm3 = vcmask 7168   ;;  %v603_v24 = vmov 0.0  }
  0x38   : > { %v226_v18 = vstv %s440_s23  ;;  %s442_s27 = sshll.u32 %s646_s16, 7  ;;  %s211_s5 = scalar_lea.vmem [#allocation5], %s436_s30 }
  0x39   : > { %s742_s4 = scalar_select %p212_p11, %s646_s16, 1  ;;  %v225_v17 = vshrl.u32 %v224_v16, 7 }
  0x3a   : > { %s336_s7 = sshll.u32 %s211_s5, 4  ;;  %s766_s8 = scalar_lea.hbm %s813_s3, %s442_s27  ;;  %s768_s7 = int_to_ptr.vmem [resolvable:$true] %s336_s7 }
  0x3b   : > { %s438_s6 = sshll.u32 %s742_s4, 3  ;;  %v227_v19 = vadd.s32 %v226_v18, %v225_v17  ;;  %s323_s16 = scalar_lea.sflag [#allocation4], %s730_s29 }
  0x3c   : > { %s215_s10 = scalar_lea.vmem %s810_s0, %s438_s6  ;;  %s219_s19 = scalar_lea.vmem %s812_s2, %s438_s6 }
  0x3d   : > { %v220_v0 = vld [vmem:[%s215_s10] sm:$0xff]  ;;  %vm228_vm0 = vcmp.lt.s32.totalorder %v227_v19, 12  ;;  %s534_s9 = scalar_lea.vmem %s768_s7, 128  ;;  %p822_p12 = scmp.ne.s32.totalorder %s817_s24, 0 }
  0x3e   : > { %v235_v2 = vand.u32 2147483647, %v220_v0  ;;  %v229_v3 = vsub.f32 %v220_v0, %v221_v1  ;;  %v234_v9 = vmax.f32 %v220_v0, 0.0  ;;  %v222_v20 = vld [vmem:[%s219_s19] sm:$0xff]  ;;  %p535_p6 = scmp.ne.s32.totalorder %s768_s7, %s534_s9  ;;  %s604_s30 = smov [#allocation5]  }
  0x3f   : > { %vm255_vm1 = vcmp.eq.f32.partialorder %v222_v20, -1.0  ;;  %v251_v29 = vsub.f32 1.0, %v222_v20  ;;  %vm257_vm4 = vcmp.ne.f32.partialorder %v222_v20, -1.0  ;;  %s538_s10 = sshll.u32 %s604_s30, 4  ;;  %s539_s10 = int_to_ptr.vmem [resolvable:$false] %s538_s10 }
  0x40   : > { %v236_v4 = vsub.f32 0.0, %v235_v2  ;;  %v230_v5 = vmul.f32 %v229_v3, %v229_v3  ;;  %vm256_vm2 = vmand %vm228_vm0, %vm255_vm1  ;;  %v305_v3 = vand.u32 127, %v224_v16  ;;  %p536_p13 = pnand %p535_p6, %p822_p12  ;;  %s540_s23 = scalar_lea.vmem %s539_s10, 256 }
  0x41   : > { %v282_v25 = vsel %vm256_vm2, 1.0, %v603_v24  ;;  %vm258_vm5 = vmand %vm228_vm0, %vm257_vm4  ;;  %p541_p10 = scmp.lt.s32.totalorder %s768_s7, %s539_s10  ;;  %p542_p2 = scmp.lt.s32.totalorder %s540_s23, %s534_s9 }
  0x42   : > { %v237_v6 = vmul.f32 1.442695, %v236_v4  ;;  %231 = vadd.xlane.f32.xlu1 %v230_v5  ;;  %v283_v27 = vsel %vm260_vm3, %v282_v25, 0.0  ;;  %v293_v36 = vsel %vm258_vm5, 1.0, %v603_v24  ;;  %vm306_vm6 = vcmp.eq.s32.totalorder %v305_v3, 0  ;;  %p537_p7 = pneg %p536_p13 }
  0x43   : > { %v294_v38 = vsel %vm260_vm3, %v293_v36, 0.0  ;;  %vm309_vm7 = vcmp.eq.s32.totalorder %v305_v3, 1  ;;  %vm313_vm8 = vcmp.eq.s32.totalorder %v305_v3, 2  ;;  %vm317_vm9 = vcmp.eq.s32.totalorder %v305_v3, 3  ;;  %p543_p4 = por %p542_p2, %p541_p10 }
  0x44   : > { %500 = vpow2.f32 %v237_v6 }
  0x45   : > { %p544_p5 = pnand %p543_p4, %p537_p7 }
  0x4e   : > { %v501_v7 = vpop.eup %500 }
  0x4f   : > { %v239_v8 = vadd.f32 1.0, %v501_v7 }
  0x51   : > { %502 = vlog2.f32 %v239_v8 }
  0x5b   : > { %v503_v10 = vpop.eup %502 }
  0x5c   : > { %v241_v11 = vmul.f32 0.6931472, %v503_v10 }
  0x5e   : > { %v242_v12 = vadd.f32 %v241_v11, %v234_v9 }
  0x60   : > { %v243_v13 = vsub.f32 %v242_v12, %v220_v0  ;;  %v247_v15 = vmin.f32 %v242_v12, 100.0 }
  0x62   : > { %v244_v14 = vmin.f32 %v243_v13, 100.0 }
  0x64   : > { %245 = vadd.xlane.f32.xlu0 %v244_v14 }
  0x68   : > { %248 = vadd.xlane.f32.xlu0 %v247_v15 }
  0xcf   : > { %v232_v21 = vpop.xlane.xlu1 %231 }
  0xd0   : > { %v233_v22 = vmul.f32 0.0078125, %v232_v21 }
  0xd2   : > { %v259_v23 = vsel %vm256_vm2, %v233_v22, 0.0 }
  0xd3   : > { %v261_v26 = vsel %vm260_vm3, %v259_v23, 0.0 }
  0xd4   : > { %262 = vadd.xlane.f32.xlu1 %v261_v26 }
  0xd8   : > { %284 = vadd.xlane.f32.xlu1 %v283_v27 }
  0xf1   : > { %v246_v28 = vpop.xlane.xlu0 %245 }
  0xf2   : > { %v250_v31 = vmul.f32 %v246_v28, %v222_v20 }
  0xf5   : > { %v249_v30 = vpop.xlane.xlu0 %248 }
  0xf6   : > { %v252_v32 = vmul.f32 %v251_v29, %v249_v30 }
  0xf8   : > { %v253_v33 = vadd.f32 %v252_v32, %v250_v31 }
  0xfa   : > { %v254_v34 = vmul.f32 0.0078125, %v253_v33 }
  0xfc   : > { %v271_v35 = vsel %vm258_vm5, %v254_v34, 0.0 }
  0xfd   : > { %v272_v37 = vsel %vm260_vm3, %v271_v35, 0.0 }
  0xfe   : > { %273 = vadd.xlane.f32.xlu0 %v272_v37 }
 0x102   : > { %295 = vadd.xlane.f32.xlu0 %v294_v38 }
 0x161   : > { %v263_v39 = vpop.xlane.xlu1 %262 }
 0x162   : > { %v264_v40 = vrot.slane %v263_v39, 4 }
 0x164   : > { %v265_v41 = vadd.f32 %v264_v40, %v263_v39 }
 0x165   : > { %v285_v46 = vpop.xlane.xlu1 %284 }
 0x166   : > { %v266_v42 = vrot.slane %v265_v41, 2  ;;  %v286_v47 = vrot.slane %v285_v46, 4 }
 0x168   : > { %v267_v43 = vadd.f32 %v266_v42, %v265_v41  ;;  %v287_v48 = vadd.f32 %v286_v47, %v285_v46 }
 0x16a   : > { %v268_v44 = vrot.slane %v267_v43, 1  ;;  %v288_v49 = vrot.slane %v287_v48, 2 }
 0x16c   : > { %v269_v45 = vadd.f32 %v268_v44, %v267_v43  ;;  %v289_v53 = vadd.f32 %v288_v49, %v287_v48 }
 0x16e   : > { %445 = vpush %v269_v45  ;;  %v290_v59 = vrot.slane %v289_v53, 1 }
 0x170   : > { %v291_v0 = vadd.f32 %v290_v59, %v289_v53 }
 0x18b   : > { %v274_v50 = vpop.xlane.xlu0 %273 }
 0x18c   : > { %v275_v51 = vrot.slane %v274_v50, 4 }
 0x18e   : > { %v276_v52 = vadd.f32 %v275_v51, %v274_v50 }
 0x18f   : > { %v296_v54 = vpop.xlane.xlu0 %295 }
 0x190   : > { %v277_v55 = vrot.slane %v276_v52, 2  ;;  %v297_v56 = vrot.slane %v296_v54, 4 }
 0x192   : > { %v298_v57 = vadd.f32 %v297_v56, %v296_v54  ;;  %v278_v58 = vadd.f32 %v277_v55, %v276_v52 }
 0x194   : > { %v299_v60 = vrot.slane %v298_v57, 2  ;;  %v279_v61 = vrot.slane %v278_v58, 1 }
 0x196   : > { %v300_v62 = vadd.f32 %v299_v60, %v298_v57  ;;  %v280_v63 = vadd.f32 %v279_v61, %v278_v58 }
 0x198   : > { %447 = vpush %v280_v63  ;;  %v301_v1 = vrot.slane %v300_v62, 1 }
 0x199   : > { %449 = vpush %v291_v0 }
 0x19a   : > { %v302_v2 = vadd.f32 %v301_v1, %v300_v62 }
 0x19c   : > { %451 = vpush %v302_v2 }
 0x19f   : > { %s446_s20 = spop %445 }
 0x1a0   : > { %v307_v4 = vstv %s446_s20 }
 0x1a1   : > { %v308_v6 = vsel %vm306_vm6, %v307_v4, 0.0 }
 0x1c9   : > { %s448_s22 = spop %447 }
 0x1ca   : > { %v310_v5 = vstv %s448_s22  ;;  %s450_s26 = spop %449 }
 0x1cb   : > { %v311_v7 = vsel %vm309_vm7, %v310_v5, 0.0  ;;  %v314_v8 = vstv %s450_s26 }
 0x1cc   : > { %v312_v9 = vadd.f32 %v311_v7, %v308_v6  ;;  %v315_v10 = vsel %vm313_vm8, %v314_v8, 0.0 }
 0x1cd   : > { %s452_s28 = spop %451 }
 0x1ce   : > { %v316_v11 = vadd.f32 %v315_v10, %v312_v9  ;;  %v318_v12 = vstv %s452_s28 }
 0x1cf   : > { %v319_v13 = vsel %vm317_vm9, %v318_v12, 0.0 }
 0x1d0   : > { %v320_v14 = vadd.f32 %v319_v13, %v316_v11 }
 0x1d2   : > { %321 = vst [vmem:[%s211_s5] sm:$0xff] %v320_v14 }
 0x1d3   : > { %547 = shalt.err (!%p544_p5)
}
 0x1d4   : > { %s548_s29 = scalar_lea.hbm %s766_s8, 128  ;;  %s552_s19 = scalar_lea.hbm %s813_s3, 256 }
 0x1d5   : > { %p549_p8 = scmp.ne.s32.totalorder %s766_s8, %s548_s29  ;;  %p553_p1 = scmp.lt.u32.totalorder %s766_s8, %s813_s3 }
 0x1d6   : > { %p554_p3 = scmp.lt.u32.totalorder %s552_s19, %s548_s29  ;;  %p556_p6 = scmp.lt.u32.totalorder %s548_s29, %s766_s8 }
 0x1d7   : > { %p550_p9 = pnand %p549_p8, %p822_p12 }
 0x1d8   : > { %p555_p11 = por %p554_p3, %p553_p1 }
 0x1d9   : > { %p551_p0 = pneg %p550_p9 }
 0x1da   : > { %p557_p13 = por %p556_p6, %p555_p11 }
 0x1dc   : > { %p558_p7 = pnand %p557_p13, %p551_p0 }
 0x1de   : > { %561 = shalt.err (!%p558_p7)
}
 0x1df   : > { %455 = dma.vmem_to_hbm [thread:$0]  (%p822_p12), %s768_s7, 128, %s766_s8, %s323_s16  }
 0x1e0 PF: > { %s348_s26 = sand.u32 1, %s588_s12   ;;  %p823_p10 = scmp.ne.s32.totalorder %s818_s25, 0 }
 0x1e1   : > { %p824_p2 = scmp.ge.s32.totalorder %s600_s15, 2  ;;  %s349_s27 = scalar_lea.sflag [#allocation4], %s348_s26 }
 0x1e3   : > { %p462_p4 = pnand %p824_p2, %p823_p10 }
 0x1e5   : > { %583 = dma.done.wait (!%p462_p4), %s349_s27, 128  }
 0x1e6   : > { %585 = vsyncadd (!%p462_p4), %s349_s27, 4294967168  ;;  %p16_p5 = scmp.ge.s32.totalorder %s650_s18, 4   ;;  %s825_s12 = smov %s592_s13 }
 0x1e7   : > { %s826_s13 = smov %s596_s14  ;;  %s827_s14 = smov %s662_s21 }
 0x1e8   : > { %s828_s15 = smov %s650_s18  ;;  %18 = sbr.rel (!%p16_p5) target bundleno = 5 (0x5), region = 83 }
 0x1ef   :  { %354 = vsyncpa [#allocation3], 1 }
 0x1f0   :  { %356 = vsyncpa [#allocation3 + $0x1], 1 }
 0x1f1   :  { %357 = vsyncpa [#allocation4], 1 }
 0x1f2   :  { %359 = vsyncpa [#allocation4 + $0x1], 1 }

</bundles_post_ra>
